<compile_context>
chip_gen: v7x
topology: tpu7x:2x2x1
jax: 0.10.0
libtpu: 0.0.40
codegen_flags: <defaults>
</compile_context>

<pallas_src>
import jax
import jax.numpy as jnp
from jax.experimental import pallas as pl
from jax.experimental.pallas import tpu as pltpu

LANE = 128
ACC_ROWS = 8      # accumulator rows (only 0..3 used); 8 keeps (8,128) tiling


def _chip_defaults():
    """(block_rows, num_shards, vmem_limit_bytes) tuned per TPU generation."""
    kind = ""
    try:
        kind = jax.devices()[0].device_kind.lower()
    except Exception:
        pass
    if "v7" in kind or "7x" in kind:
        # 2 TensorCores + ~3.2 TB/s HBM: big blocks, both cores, explicit VMEM limit
        # (physical VMEM is only 64 MiB, leave headroom for compiler scratch).
        return 8192, 2, 32 * 1024 * 1024
    if "v6" in kind:
        # Single TC; 128 MiB physical VMEM easily holds 8192-row double buffers.
        return 8192, 1, 32 * 1024 * 1024
    # v5e / unknown: stay inside the 16 MiB default scoped-VMEM.
    return 4096, 1, None


def _elem_partial_sums(x, t, row_valid=None):
    """Per-element [pos_cnt, neg_cnt, pos_bce, neg_bce] pieces (f32)."""
    pos = t == 1
    neg = t == 0
    if row_valid is not None:
        pos = jnp.logical_and(pos, row_valid)
        neg = jnp.logical_and(neg, row_valid)
    # Stable binary_cross_entropy_with_logits: max(x,0) - x*t + log1p(exp(-|x|)).
    # Only elements with t in {0,1} ever get a non-zero weight, so x*t is equivalent
    # to where(t==1, x, 0) for everything that is counted.  Selects (not multiplies)
    # also guarantee stale/NaN tail values never reach the sums.
    bce = jnp.maximum(x, 0.0) - jnp.where(pos, x, 0.0) + jnp.log1p(jnp.exp(-jnp.abs(x)))
    return (pos.astype(jnp.float32),
            neg.astype(jnp.float32),
            jnp.where(pos, bce, 0.0),
            jnp.where(neg, bce, 0.0))


def _make_wbce_kernel(block_rows, num_blocks, blocks_per_shard, tail_rows, num_shards):
    """Builds the kernel with static tiling parameters closed over."""
    last = num_blocks - 1
    has_tail = tail_rows != block_rows
    may_overshoot = num_shards * blocks_per_shard > num_blocks

    def accum(x_ref, t_ref, out_ref, valid_rows):
        x = x_ref[...].astype(jnp.float32)
        t = t_ref[...]
        if valid_rows is None:
            valid = None
        else:
            # Tail block: only `valid_rows` rows were DMA'd; mask the rest with a
            # sublane iota (keeps int8 loads tile-aligned, no sub-slicing).
            row = jax.lax.broadcasted_iota(jnp.int32, (block_rows, LANE), 0)
            valid = row < valid_rows
        p_cnt, n_cnt, p_bce, n_bce = _elem_partial_sums(x, t, valid)
        partial = jnp.concatenate(
            [jnp.sum(v, axis=0, keepdims=True) for v in (p_cnt, n_cnt, p_bce, n_bce)],
            axis=0)
        out_ref[0:4, :] += partial          # single fused 4-row RMW

    def kernel(x_ref, t_ref, out_ref):
        if num_shards > 1:
            s = pl.program_id(0)            # shard (parallel axis)
            i = pl.program_id(1)            # block within shard (arbitrary axis)
            g = s * blocks_per_shard + i    # global block index (may overshoot)
        else:
            i = pl.program_id(0)
            g = i

        @pl.when(i == 0)
        def _init():
            out_ref[...] = jnp.zeros_like(out_ref)

        if not has_tail and not may_overshoot:
            accum(x_ref, t_ref, out_ref, None)
        else:
            full_pred = (g < last) if has_tail else (g <= last)

            @pl.when(full_pred)
            def _full():
                accum(x_ref, t_ref, out_ref, None)

            if has_tail:
                @pl.when(g == last)
                def _tail():
                    accum(x_ref, t_ref, out_ref, tail_rows)

    return kernel


def boundary_loss(bd_pre, bd_gt, coeff_bce=20.0, max_block_rows=None, num_shards=None):
    """JAX/Pallas equivalent of BondaryLoss.forward (PyTorch)."""
    n, c, h, w = bd_pre.shape
    total = n * c * h * w
    assert bd_gt.size == total, "bd_gt must have the same number of elements as bd_pre"

    def_rows, def_shards, def_vmem = _chip_defaults()
    if max_block_rows is None:
        max_block_rows = def_rows
    if num_shards is None:
        num_shards = def_shards

    # log_p = bd_pre.permute(0,2,3,1).contiguous().view(1,-1).
    if c == 1:
        x = bd_pre.reshape(-1)              # pure relabeling, no HBM pass
    else:
        # TODO(synk): for c > 1 this NCHW->NHWC permute is still a materialized HBM
        # round trip; blocking the 4-D tensors directly and realigning in VMEM (XLU)
        # would remove it.
        x = jnp.transpose(bd_pre, (0, 2, 3, 1)).reshape(-1)

    t = bd_gt.reshape(-1)
    if t.dtype == jnp.bool_:
        t = t.astype(jnp.int8)              # stream targets at 1 byte/elem
    # Float / wider targets are streamed as-is (converting them would add an HBM pass).

    main = (total // LANE) * LANE
    rem = total - main
    rows = main // LANE

    sums = jnp.zeros((4,), jnp.float32)

    if rows > 0:
        x2 = (x if rem == 0 else x[:main]).reshape(rows, LANE)
        t2 = (t if rem == 0 else t[:main]).reshape(rows, LANE)

        block_rows = min(max_block_rows, rows)
        if block_rows < rows:
            # Tiled path: keep the sublane dim aligned (32 covers f32(8) and int8(32)).
            block_rows = max(32, (block_rows // 32) * 32)
            if block_rows > rows:
                block_rows = rows
        num_blocks = -(-rows // block_rows)
        tail_rows = rows - (num_blocks - 1) * block_rows
        shards = num_shards if num_blocks >= num_shards else 1
        blocks_per_shard = -(-num_blocks // shards)
        last = num_blocks - 1

        if shards > 1:
            if shards * blocks_per_shard > num_blocks:
                def in_index(s, i):
                    # Clamp overshooting steps onto the last block; the kernel skips
                    # accumulation for those steps.
                    return (jnp.minimum(s * blocks_per_shard + i, last), 0)
            else:
                def in_index(s, i):
                    return (s * blocks_per_shard + i, 0)
            out_index = lambda s, i: (s, 0)
            grid = (shards, blocks_per_shard)
            dims = ("parallel", "arbitrary")
        else:
            in_index = lambda i: (i, 0)
            out_index = lambda i: (0, 0)
            grid = (num_blocks,)
            dims = ("arbitrary",)

        kernel = _make_wbce_kernel(block_rows, num_blocks, blocks_per_shard,
                                   tail_rows, shards)

        out_bytes = shards * ACC_ROWS * LANE * 4
        cost = pl.CostEstimate(
            flops=15 * main,
            transcendentals=2 * main,
            bytes_accessed=int(x2.size * x2.dtype.itemsize
                               + t2.size * t2.dtype.itemsize + out_bytes),
        )
        cp_kwargs = dict(dimension_semantics=dims)
        if def_vmem is not None:
            cp_kwargs["vmem_limit_bytes"] = def_vmem

        partials = pl.pallas_call(
            kernel,
            out_shape=jax.ShapeDtypeStruct((shards * ACC_ROWS, LANE), jnp.float32),
            grid_spec=pltpu.PrefetchScalarGridSpec(
                num_scalar_prefetch=0,
                grid=grid,
                in_specs=[
                    pl.BlockSpec((block_rows, LANE), in_index),
                    pl.BlockSpec((block_rows, LANE), in_index),
                ],
                out_specs=pl.BlockSpec((ACC_ROWS, LANE), out_index),
            ),
            compiler_params=pltpu.CompilerParams(**cp_kwargs),
            cost_estimate=cost,
        )(x2, t2)

        acc = partials.reshape(shards, ACC_ROWS, LANE)
        sums = sums + jnp.sum(acc, axis=(0, 2))[0:4]

    if rem:
        # <128-element remainder: fold in with plain jnp (no full-array pad pass).
        xr = x[main:].astype(jnp.float32)
        tr = t[main:]
        p_cnt, n_cnt, p_bce, n_bce = _elem_partial_sums(xr, tr)
        sums = sums + jnp.stack([p_cnt.sum(), n_cnt.sum(), p_bce.sum(), n_bce.sum()])

    pos_num, neg_num, pos_loss, neg_loss = sums[0], sums[1], sums[2], sums[3]
    sum_num = pos_num + neg_num
    # weight[pos] = neg_num/sum_num ; weight[neg] = pos_num/sum_num ; else 0.
    # Note: if there are no 0/1 labels at all this is NaN, matching the reference.
    loss_sum = (neg_num / sum_num) * pos_loss + (pos_num / sum_num) * neg_loss
    # reduction='mean' divides by the TOTAL element count (zero-weight ones included).
    return coeff_bce * loss_sum / jnp.float32(total)


def _reference_loss(bd_pre, bd_gt, coeff_bce=20.0):
    """Pure-JAX reference mirroring the PyTorch code, for validation."""
    x = jnp.transpose(bd_pre, (0, 2, 3, 1)).reshape(-1).astype(jnp.float32)
    t = bd_gt.reshape(-1).astype(jnp.float32)
    pos = t == 1.0
    neg = t == 0.0
    pos_num = jnp.sum(pos.astype(jnp.float32))
    neg_num = jnp.sum(neg.astype(jnp.float32))
    sum_num = pos_num + neg_num
    wgt = jnp.where(pos, neg_num / sum_num, 0.0)
    wgt = jnp.where(neg, pos_num / sum_num, wgt)
    bce = jnp.maximum(x, 0.0) - x * t + jnp.log1p(jnp.exp(-jnp.abs(x)))
    return coeff_bce * jnp.mean(wgt * bce)


if __name__ == "__main__":
    key = jax.random.PRNGKey(0)
    keys = jax.random.split(key, 10)

    def check(bd_pre, bd_gt, **kw):
        out = jax.block_until_ready(boundary_loss(bd_pre, bd_gt, **kw))
        ref = jax.block_until_ready(_reference_loss(bd_pre, bd_gt))
        assert jnp.allclose(out, ref, rtol=1e-5, atol=1e-5), (out, ref, kw)

    # Case 1: canonical module shapes (N,1,H,W), float targets, single full block.
    bd_pre = jax.random.normal(keys[0], (2, 1, 16, 16), dtype=jnp.float32)
    bd_gt = (jax.random.uniform(keys[1], (2, 16, 16)) > 0.7).astype(jnp.float32)
    check(bd_pre, bd_gt)

    # Case 2: multi-channel path, bool (1-byte) targets, multi-block with a partial
    # tail block and 2 shards (same code paths big inputs hit on v7x).
    bd_pre = jax.random.normal(keys[2], (1, 2, 36, 64), dtype=jnp.float32)
    bd_gt = jax.random.uniform(keys[3], (1, 36, 128)) > 0.6          # bool target
    check(bd_pre, bd_gt, max_block_rows=16, num_shards=2)

    # Case 3: shard overshoot (3 blocks over 2 shards), bool targets, no tail.
    bd_pre = jax.random.normal(keys[4], (1, 1, 96, 128), dtype=jnp.float32)
    bd_gt = jax.random.uniform(keys[5], (1, 96, 128)) > 0.5
    check(bd_pre, bd_gt, max_block_rows=32, num_shards=2)

    # Case 4: element count not a multiple of 128 (kernel + host-side remainder).
    bd_pre = jax.random.normal(keys[6], (1, 1, 12, 12), dtype=jnp.float32)
    bd_gt = (jax.random.uniform(keys[7], (1, 12, 12)) > 0.5).astype(jnp.float32)
    check(bd_pre, bd_gt)

    # Case 5: fewer than 128 elements (pure host-side fallback path).
    bd_pre = jax.random.normal(keys[8], (1, 1, 10, 10), dtype=jnp.float32)
    bd_gt = jax.random.uniform(keys[9], (1, 10, 10)) > 0.5
    check(bd_pre, bd_gt)

    print("KERNEL_OK")
</pallas_src>

<mosaic_0001>
module attributes {stable_mosaic.version = 11 : i64} {
  func.func @kernel(%arg0: i32, %arg1: memref<4x128xf32, #tpu.memory_space<vmem>>, %arg2: memref<4x128xf32, #tpu.memory_space<vmem>>, %arg3: memref<8x128xf32, #tpu.memory_space<vmem>>) attributes {dimension_semantics = [#tpu.dimension_semantics<arbitrary>], iteration_bounds = array<i64: 1>, scalar_prefetch = 0 : i64, scratch_operands = 0 : i64, tpu.core_type = #tpu.core_type<tc>, window_params = [{transform_indices = @transform_0, window_bounds = array<i64: 4, 128>}, {transform_indices = @transform_1, window_bounds = array<i64: 4, 128>}, {pipeline_mode = #tpu.pipeline_mode<synchronous>, transform_indices = @transform_2, window_bounds = array<i64: 8, 128>}]} {
    %c0_i32 = arith.constant 0 : i32
    %0 = arith.cmpi eq, %arg0, %c0_i32 : i32
    %1 = arith.extui %0 : i1 to i32
    %c0_i32_0 = arith.constant 0 : i32
    %2 = arith.cmpi ne, %1, %c0_i32_0 : i32
    scf.if %2 {
      %cst_18 = arith.constant 0.000000e+00 : f32
      %40 = vector.broadcast %cst_18 : f32 to vector<8x128xf32>
      %c0_19 = arith.constant 0 : index
      %c0_20 = arith.constant 0 : index
      %41 = vector.load %arg3[%c0_19, %c0_20] : memref<8x128xf32, #tpu.memory_space<vmem>>, vector<8x128xf32>
      tpu.vector_store %arg3[%c0_19, %c0_20], %40 {strides = array<i32>} : memref<8x128xf32, #tpu.memory_space<vmem>>, vector<8x128xf32>,
    } else {
    }
    %c0 = arith.constant 0 : index
    %c0_1 = arith.constant 0 : index
    %3 = vector.load %arg1[%c0, %c0_1] : memref<4x128xf32, #tpu.memory_space<vmem>>, vector<4x128xf32>
    %c0_2 = arith.constant 0 : index
    %c0_3 = arith.constant 0 : index
    %4 = vector.load %arg2[%c0_2, %c0_3] : memref<4x128xf32, #tpu.memory_space<vmem>>, vector<4x128xf32>
    %cst = arith.constant 1.000000e+00 : f32
    %5 = vector.broadcast %cst : f32 to vector<4x128xf32>
    %6 = arith.cmpf oeq, %4, %5 : vector<4x128xf32>
    %cst_4 = arith.constant 0.000000e+00 : f32
    %7 = vector.broadcast %cst_4 : f32 to vector<4x128xf32>
    %8 = arith.cmpf oeq, %4, %7 : vector<4x128xf32>
    %cst_5 = arith.constant 0.000000e+00 : f32
    %9 = vector.broadcast %cst_5 : f32 to vector<4x128xf32>
    %10 = arith.maximumf %3, %9 : vector<4x128xf32>
    %cst_6 = arith.constant 0.000000e+00 : f32
    %11 = vector.broadcast %cst_6 : f32 to vector<4x128xf32>
    %12 = arith.select %6, %3, %11 : vector<4x128xi1>, vector<4x128xf32>
    %13 = arith.subf %10, %12 : vector<4x128xf32>
    %14 = math.absf %3 : vector<4x128xf32>
    %cst_7 = arith.constant 0.000000e+00 : f32
    %15 = vector.broadcast %cst_7 : f32 to vector<4x128xf32>
    %16 = arith.subf %15, %14 : vector<4x128xf32>
    %17 = math.exp %16 : vector<4x128xf32>
    %18 = math.log1p %17 : vector<4x128xf32>
    %19 = arith.addf %13, %18 : vector<4x128xf32>
    %20 = arith.extui %6 : vector<4x128xi1> to vector<4x128xi32>
    %21 = arith.sitofp %20 : vector<4x128xi32> to vector<4x128xf32>
    %22 = arith.extui %8 : vector<4x128xi1> to vector<4x128xi32>
    %23 = arith.sitofp %22 : vector<4x128xi32> to vector<4x128xf32>
    %cst_8 = arith.constant 0.000000e+00 : f32
    %24 = vector.broadcast %cst_8 : f32 to vector<4x128xf32>
    %25 = arith.select %6, %19, %24 : vector<4x128xi1>, vector<4x128xf32>
    %cst_9 = arith.constant 0.000000e+00 : f32
    %26 = vector.broadcast %cst_9 : f32 to vector<4x128xf32>
    %27 = arith.select %8, %19, %26 : vector<4x128xi1>, vector<4x128xf32>
    %cst_10 = arith.constant dense<0.000000e+00> : vector<128xf32>
    %28 = vector.multi_reduction <add>, %21, %cst_10 [0] : vector<4x128xf32> to vector<128xf32>
    %29 = vector.shape_cast %28 : vector<128xf32> to vector<1x128xf32>
    %cst_11 = arith.constant dense<0.000000e+00> : vector<128xf32>
    %30 = vector.multi_reduction <add>, %23, %cst_11 [0] : vector<4x128xf32> to vector<128xf32>
    %31 = vector.shape_cast %30 : vector<128xf32> to vector<1x128xf32>
    %cst_12 = arith.constant dense<0.000000e+00> : vector<128xf32>
    %32 = vector.multi_reduction <add>, %25, %cst_12 [0] : vector<4x128xf32> to vector<128xf32>
    %33 = vector.shape_cast %32 : vector<128xf32> to vector<1x128xf32>
    %cst_13 = arith.constant dense<0.000000e+00> : vector<128xf32>
    %34 = vector.multi_reduction <add>, %27, %cst_13 [0] : vector<4x128xf32> to vector<128xf32>
    %35 = vector.shape_cast %34 : vector<128xf32> to vector<1x128xf32>
    %36 = tpu.concatenate %29, %31, %33, %35 in 0 : vector<1x128xf32>, vector<1x128xf32>, vector<1x128xf32>, vector<1x128xf32> -> vector<4x128xf32>
    %c0_14 = arith.constant 0 : index
    %c0_15 = arith.constant 0 : index
    %37 = vector.load %arg3[%c0_14, %c0_15] : memref<8x128xf32, #tpu.memory_space<vmem>>, vector<4x128xf32>
    %38 = arith.addf %37, %36 : vector<4x128xf32>
    %c0_16 = arith.constant 0 : index
    %c0_17 = arith.constant 0 : index
    %39 = vector.load %arg3[%c0_16, %c0_17] : memref<8x128xf32, #tpu.memory_space<vmem>>, vector<4x128xf32>
    tpu.vector_store %arg3[%c0_16, %c0_17], %38 {strides = array<i32>} : memref<8x128xf32, #tpu.memory_space<vmem>>, vector<4x128xf32>,
    return
  }
  func.func @transform_0(%arg0: i32) -> (i32, i32) {
    %c0_i32 = arith.constant 0 : i32
    %c0_i32_0 = arith.constant 0 : i32
    return %arg0, %c0_i32 : i32, i32
  }
  func.func @transform_1(%arg0: i32) -> (i32, i32) {
    %c0_i32 = arith.constant 0 : i32
    %c0_i32_0 = arith.constant 0 : i32
    return %arg0, %c0_i32 : i32, i32
  }
  func.func @transform_2(%arg0: i32) -> (i32, i32) {
    %c0_i32 = arith.constant 0 : i32
    %c0_i32_0 = arith.constant 0 : i32
    %c0_i32_1 = arith.constant 0 : i32
    return %c0_i32, %c0_i32_0 : i32, i32
  }
}

</mosaic_0001>

<bundles_post_ra>
// kernel: tpu_custom_call.1
= control target key start
LH: loop header
LB: loop body
LE: loop exit
PB: predicated region body
PF: predicated region fallthrough
CT: control target
= control target key end

     0   :  { %7 = vsyncpa [#allocation3], 0  ;;  %s268_s0 = inlined_call_operand.hbm [shape: f32[4,128], index: 0, kind: input, shape index: {}]   ;;  %s269_s1 = inlined_call_operand.hbm [shape: f32[4,128], index: 1, kind: input, shape index: {}]   ;;  %s270_s2 = inlined_call_operand.hbm [shape: f32[8,128], index: 2, kind: output, shape index: {}]  }
   0x1   :  { %8 = vsyncpa [#allocation6], 0 }
   0x2   :  { %9 = vsyncpa [#allocation4], 0  ;;  %s204_s9 = smov [#allocation2]   ;;  %s205_s11 = smov [#allocation5]  }
   0x3   :  { %s16_s10 = sshll.u32 %s204_s9, 4  ;;  %s26_s12 = sshll.u32 %s205_s11, 4  ;;  %s17_s10 = int_to_ptr.vmem [resolvable:$true] %s16_s10  ;;  %s27_s12 = int_to_ptr.vmem [resolvable:$true] %s26_s12 }
   0x4   :  { %s132_s15 = scalar_lea.hbm %s268_s0, 64 }
   0x5   :  { %p133_p0 = scmp.ne.s32.totalorder %s268_s0, %s132_s15  ;;  %p136_p1 = scmp.lt.u32.totalorder %s132_s15, %s268_s0 }
   0x7   :  { %p138_p2 = pnand %p136_p1, %p133_p0 }
   0x9   :  { %141 = shalt.err (!%p138_p2)
}
   0xa   :  { %s142_s20 = scalar_lea.vmem %s17_s10, 64  ;;  %p147_p4 = scmp.lt.s32.totalorder %s17_s10, %s17_s10 }
   0xb   :  { %p143_p3 = scmp.ne.s32.totalorder %s17_s10, %s142_s20  ;;  %p148_p5 = scmp.lt.s32.totalorder %s142_s20, %s142_s20 }
   0xd   :  { %p149_p6 = por %p148_p5, %p147_p4 }
   0xf   :  { %p150_p7 = pnand %p149_p6, %p143_p3 }
  0x11   :  { %153 = shalt.err (!%p150_p7)
}
  0x12   :  { %19 = dma.hbm_to_vmem [thread:$0]  %s268_s0, 64, %s17_s10, [#allocation3]  }
  0x13   :  { %s154_s25 = scalar_lea.hbm %s269_s1, 64 }
  0x14   :  { %p155_p8 = scmp.ne.s32.totalorder %s269_s1, %s154_s25  ;;  %p158_p9 = scmp.lt.u32.totalorder %s154_s25, %s269_s1 }
  0x16   :  { %p160_p10 = pnand %p158_p9, %p155_p8 }
  0x18   :  { %163 = shalt.err (!%p160_p10)
}
  0x19   :  { %s164_s30 = scalar_lea.vmem %s27_s12, 64  ;;  %p169_p12 = scmp.lt.s32.totalorder %s27_s12, %s27_s12 }
  0x1a   :  { %p165_p11 = scmp.ne.s32.totalorder %s27_s12, %s164_s30  ;;  %p170_p13 = scmp.lt.s32.totalorder %s164_s30, %s164_s30 }
  0x1c   :  { %p171_p0 = por %p170_p13, %p169_p12 }
  0x1e   :  { %p172_p1 = pnand %p171_p0, %p165_p11 }
  0x20   :  { %175 = shalt.err (!%p172_p1)
}
  0x21   :  { %29 = dma.hbm_to_vmem [thread:$0]  %s269_s1, 64, %s27_s12, [#allocation6]  }
  0x22   :  { %198 = dma.done.wait [#allocation3], 64  }
  0x23   :  { %199 = vsyncadd [#allocation3], 4294967232 }
  0x24   :  { %200 = dma.done.wait [#allocation6], 64  }
  0x25   :  { %201 = vsyncadd [#allocation6], 4294967232  ;;  %v206_v0 = vmov 0.0   ;;  %v41_v1 = vld [vmem:[#allocation2] sm:$0xf]  ;;  %vm68_vm2 = vcmask 1043456  }
  0x26   :  { %40 = vst [vmem:[#allocation7] sm:$0xff] %v206_v0  ;;  %v48_v2 = vand.u32 2147483647, %v41_v1  ;;  %v42_v5 = vld [vmem:[#allocation5] sm:$0xf]  ;;  %v45_v16 = vmax.f32 %v41_v1, 0.0 }
  0x27   :  { %vm44_vm0 = vcmp.eq.f32.partialorder %v42_v5, 0.0  ;;  %vm43_vm1 = vcmp.eq.f32.partialorder %v42_v5, 1.0  ;;  %vm97_vm4 = vcmask 1040384   ;;  %vm99_vm5 = vcmask 1041408   ;;  %s207_s1 = smov [#allocation7]  }
  0x28   :  { %v49_v3 = vsub.f32 0.0, %v48_v2  ;;  %v122_v7 = vsel %vm43_vm1, 1.0, %v206_v0  ;;  %v123_v8 = vsel %vm44_vm0, 1.0, %v206_v0  ;;  %v46_v18 = vsel %vm43_vm1, %v41_v1, 0.0  ;;  %s112_s4 = sshll.u32 %s207_s1, 4  ;;  %s113_s4 = int_to_ptr.vmem [resolvable:$true] %s112_s4 }
  0x29   :  { %v69_v10 = vsel %vm68_vm2, %v122_v7, 0.0  ;;  %v76_v11 = vsel %vm68_vm2, %v123_v8, 0.0  ;;  %v47_v23 = vsub.f32 %v45_v16, %v46_v18  ;;  %vm101_vm6 = vcmask 1042432   ;;  %s176_s5 = scalar_lea.vmem %s113_s4, 128  ;;  %p181_p3 = scmp.lt.s32.totalorder %s113_s4, %s113_s4 }
  0x2a   :  { %v50_v4 = vmul.f32 1.442695, %v49_v3  ;;  %v70_v13 = vrot.slane %v69_v10, 4  ;;  %v77_v14 = vrot.slane %v76_v11, 4  ;;  %p177_p2 = scmp.ne.s32.totalorder %s113_s4, %s176_s5  ;;  %p182_p4 = scmp.lt.s32.totalorder %s176_s5, %s176_s5 }
  0x2c   :  { %128 = vpow2.f32 %v50_v4  ;;  %v71_v19 = vadd.f32 %v70_v13, %v69_v10  ;;  %v78_v20 = vadd.f32 %v77_v14, %v76_v11  ;;  %p183_p5 = por %p182_p4, %p181_p3 }
  0x2d   :  { %v103_v52 = vld [vmem:[#allocation7] sm:$0xf] }
  0x2e   :  { %v72_v25 = vrot.slane %v71_v19, 2  ;;  %v79_v26 = vrot.slane %v78_v20, 2  ;;  %p184_p6 = pnand %p183_p5, %p177_p2 }
  0x30   :  { %v73_v29 = vadd.f32 %v72_v25, %v71_v19  ;;  %v80_v30 = vadd.f32 %v79_v26, %v78_v20 }
  0x32   :  { %v74_v37 = vrot.slane %v73_v29, 1  ;;  %v81_v38 = vrot.slane %v80_v30, 1 }
  0x34   :  { %v75_v43 = vadd.f32 %v74_v37, %v73_v29  ;;  %v82_v44 = vadd.f32 %v81_v38, %v80_v30 }
  0x36   :  { %v129_v6 = vpop.eup %128  ;;  %v98_v49 = vsel %vm97_vm4, %v75_v43, %v82_v44 }
  0x37   :  { %v52_v9 = vadd.f32 1.0, %v129_v6  ;;  %v55_v12 = vmul.f32 -0.5, %v129_v6  ;;  %v58_v17 = vand.u32 2147483647, %v129_v6 }
  0x39   :  { %130 = vlog2.f32 %v52_v9  ;;  %v56_v15 = vadd.f32 1.0, %v55_v12  ;;  %vm59_vm3 = vcmp.lt.f32.partialorder %v58_v17, 0.0004427343 }
  0x3b   :  { %v57_v21 = vmul.f32 %v129_v6, %v56_v15 }
  0x43   :  { %v131_v22 = vpop.eup %130 }
  0x44   :  { %v54_v24 = vmul.f32 0.6931472, %v131_v22 }
  0x46   :  { %v60_v27 = vsel %vm59_vm3, %v57_v21, %v54_v24 }
  0x47   :  { %v61_v28 = vadd.f32 %v60_v27, %v47_v23 }
  0x49   :  { %v66_v31 = vsel %vm43_vm1, %v61_v28, 0.0  ;;  %v67_v32 = vsel %vm44_vm0, %v61_v28, 0.0 }
  0x4a   :  { %v83_v33 = vsel %vm68_vm2, %v66_v31, 0.0  ;;  %v90_v34 = vsel %vm68_vm2, %v67_v32, 0.0 }
  0x4b   :  { %v84_v35 = vrot.slane %v83_v33, 4  ;;  %v91_v36 = vrot.slane %v90_v34, 4 }
  0x4d   :  { %v85_v39 = vadd.f32 %v84_v35, %v83_v33  ;;  %v92_v40 = vadd.f32 %v91_v36, %v90_v34 }
  0x4f   :  { %v86_v41 = vrot.slane %v85_v39, 2  ;;  %v93_v42 = vrot.slane %v92_v40, 2 }
  0x51   :  { %v87_v45 = vadd.f32 %v86_v41, %v85_v39  ;;  %v94_v46 = vadd.f32 %v93_v42, %v92_v40 }
  0x53   :  { %v88_v47 = vrot.slane %v87_v45, 1  ;;  %v95_v48 = vrot.slane %v94_v46, 1 }
  0x55   :  { %v89_v50 = vadd.f32 %v88_v47, %v87_v45  ;;  %v96_v51 = vadd.f32 %v95_v48, %v94_v46 }
  0x57   :  { %v100_v53 = vsel %vm99_vm5, %v98_v49, %v89_v50 }
  0x58   :  { %v102_v54 = vsel %vm101_vm6, %v100_v53, %v96_v51 }
  0x59   :  { %v104_v55 = vadd.f32 %v103_v52, %v102_v54 }
  0x5b   :  { %105 = vst [vmem:[#allocation7] sm:$0xf] %v104_v55 }
  0x5c   :  { %187 = shalt.err (!%p184_p6)
}
  0x5d   :  { %s188_s8 = scalar_lea.hbm %s270_s2, 128 }
  0x5e   :  { %p189_p7 = scmp.ne.s32.totalorder %s270_s2, %s188_s8  ;;  %p192_p8 = scmp.lt.u32.totalorder %s188_s8, %s270_s2 }
  0x60   :  { %p194_p9 = pnand %p192_p8, %p189_p7 }
  0x62   :  { %197 = shalt.err (!%p194_p9)
}
  0x63   :  { %115 = dma.vmem_to_hbm [thread:$0]  %s113_s4, 128, %s270_s2, [#allocation4]  }
  0x64   :  { %202 = dma.done.wait [#allocation4], 128  }
  0x65   :  { %203 = vsyncadd [#allocation4], 4294967168 }
  0x66   :  { %119 = vsyncpa [#allocation3], 1 }
  0x67   :  { %120 = vsyncpa [#allocation6], 1 }
  0x68   :  { %121 = vsyncpa [#allocation4], 1 }

</bundles_post_ra>
